<compile_context>
chip_gen: v7x
topology: tpu7x:2x2x1
jax: 0.10.0
libtpu: 0.0.40
codegen_flags: <defaults>
</compile_context>

<pallas_src>
import functools

import jax
import jax.numpy as jnp
from jax.experimental import pallas as pl
from jax.experimental.pallas import tpu as pltpu


def _round_up(x, m):
    return ((x + m - 1) // m) * m


def _points_predictor_kernel(x_ref, w_ref, b_ref, o_ref):
    # x_ref: (TN, K)   x.dtype   streamed / double-buffered
    # w_ref: (K, OUT)  f32       resident across the whole grid
    # b_ref: (1, OUT)  f32       resident
    # o_ref: (TN, OUT) f32
    acc = jnp.dot(x_ref[...], w_ref[...], preferred_element_type=jnp.float32)
    o_ref[...] = (acc + b_ref[...]).astype(o_ref.dtype)


def prepare_points_predictor_params(weight, bias):
    """One-time conversion of torch-layout params to kernel layout.

    weight: (OUT, K) torch-style Linear weight  -> (K, OUT) float32
    bias:   (OUT,)                              -> (1, OUT) float32
    Kept in f32 (weight is only K x 8, bandwidth cost is negligible) to avoid
    bf16-quantizing the std=1e-3 weights.  Do this once at parameter-load time.
    """
    w_t = jnp.asarray(weight, dtype=jnp.float32).T
    b2 = jnp.asarray(bias, dtype=jnp.float32).reshape(1, -1)
    return w_t, b2


def _choose_tile_n(n, tile_n, k, x_bytes):
    """Pick the row tile TN.

    - multiple of 16 (covers f32 and bf16 sublane packing),
    - >= 2 grid steps when N allows (v7x megacore: 2 TCs need >= 2 steps),
    - no bigger than N rounded up (avoid pointless padding for tiny N),
    - capped so 2 double-buffered (TN, K) x tiles stay <= ~32 MiB, which keeps
      the whole kernel inside the 48 MiB VMEM limit on every generation
      (incl. v7x's 64 MiB physical VMEM and large-K ROI variants).
    """
    two_way = _round_up(-(-n // 2), 16)                    # ceil(n/2), 16-aligned
    tn = max(16, min(tile_n, two_way, _round_up(n, 16)))
    max_x_buffer_bytes = 32 * 1024 * 1024                  # double-buffered budget
    cap = max(16, (max_x_buffer_bytes // (2 * k * x_bytes)) // 16 * 16)
    return min(tn, cap)


@functools.partial(jax.jit, static_argnames=("num_points", "tile_n"))
def points_predictor_forward(x, weight_t, bias2, *, num_points=4, tile_n=2048):
    """x: (N, C, H, W) or (N, K). weight_t: (K, OUT) f32. bias2: (1, OUT) f32.

    Returns (N, num_points, 2) float32 (same as the PyTorch module).
    """
    if x.ndim > 2:
        x = x.reshape(x.shape[0], -1)                       # flatten(start_dim=1)
    n, k = x.shape
    k_w, out_f = weight_t.shape
    assert k == k_w, (k, k_w)
    assert out_f == num_points * 2, (out_f, num_points)

    x_bytes = jnp.dtype(x.dtype).itemsize
    tn = _choose_tile_n(n, tile_n, k, x_bytes)
    grid = (pl.cdiv(n, tn),)                                # partial last block OK

    cost = pl.CostEstimate(
        flops=2 * n * k * out_f,
        transcendentals=0,
        bytes_accessed=(n * k * x_bytes                     # x stream (dominant)
                        + k * out_f * 4                     # resident f32 weight
                        + n * out_f * 4),                   # f32 output
    )

    y = pl.pallas_call(
        _points_predictor_kernel,
        out_shape=jax.ShapeDtypeStruct((n, out_f), jnp.float32),
        grid_spec=pltpu.PrefetchScalarGridSpec(
            num_scalar_prefetch=0,
            grid=grid,
            in_specs=[
                pl.BlockSpec((tn, k), lambda i: (i, 0)),        # streamed x tiles
                pl.BlockSpec((k, out_f), lambda i: (0, 0)),     # resident W^T
                pl.BlockSpec((1, out_f), lambda i: (0, 0)),     # resident bias
            ],
            out_specs=pl.BlockSpec((tn, out_f), lambda i: (i, 0)),
        ),
        compiler_params=pltpu.CompilerParams(
            dimension_semantics=("parallel",),     # megacore sharding on v7x
            vmem_limit_bytes=48 * 1024 * 1024,     # > v5e 16 MiB default, < v7x 64 MiB
        ),
        cost_estimate=cost,
    )(x, weight_t, bias2)

    return y.reshape(-1, num_points, 2)


if __name__ == "__main__":
    # Small shapes consistent with the module: ROI features (N, C, H, W).
    N, C, H, W = 2, 4, 16, 16
    num_points = 4
    std = 0.001
    input_size = C * H * W
    out_features = num_points * 2

    key = jax.random.PRNGKey(0)
    kx, kw = jax.random.split(key)

    x = jax.random.normal(kx, (N, C, H, W), dtype=jnp.float32)
    # nn.init.normal_(weight, std=0.001); nn.init.constant_(bias, 0)
    weight = std * jax.random.normal(kw, (out_features, input_size), dtype=jnp.float32)
    bias = jnp.zeros((out_features,), dtype=jnp.float32)

    # One-time parameter prep (pre-transposed, f32) — kept off the hot path.
    w_t, b2 = prepare_points_predictor_params(weight, bias)

    out = points_predictor_forward(x, w_t, b2, num_points=num_points)
    out = jax.block_until_ready(out)

    # Correctness checks.
    assert out.shape == (N, num_points, 2), out.shape
    assert out.dtype == jnp.float32, out.dtype

    # Full-precision reference (module semantics).
    ref = (x.reshape(N, -1) @ weight.T + bias).reshape(-1, num_points, 2)
    assert jnp.allclose(out, ref, atol=5e-4, rtol=5e-3), "mismatch vs f32 reference"

    print("KERNEL_OK")
</pallas_src>

<mosaic_0001>
module attributes {stable_mosaic.version = 11 : i64} {
  func.func @_points_predictor_kernel(%arg0: i32, %arg1: memref<16x1024xf32, #tpu.memory_space<vmem>>, %arg2: memref<1024x8xf32, #tpu.memory_space<vmem>>, %arg3: memref<1x8xf32, #tpu.memory_space<vmem>>, %arg4: memref<16x8xf32, #tpu.memory_space<vmem>>) attributes {dimension_semantics = [#tpu.dimension_semantics<parallel>], iteration_bounds = array<i64: 1>, scalar_prefetch = 0 : i64, scratch_operands = 0 : i64, tpu.core_type = #tpu.core_type<tc>, window_params = [{transform_indices = @transform_0, window_bounds = array<i64: 16, 1024>}, {pipeline_mode = #tpu.pipeline_mode<synchronous>, transform_indices = @transform_1, window_bounds = array<i64: 1024, 8>}, {pipeline_mode = #tpu.pipeline_mode<synchronous>, transform_indices = @transform_2, window_bounds = array<i64: 1, 8>}, {transform_indices = @transform_3, window_bounds = array<i64: 16, 8>}]} {
    %c0 = arith.constant 0 : index
    %c0_0 = arith.constant 0 : index
    %0 = vector.load %arg1[%c0, %c0_0] : memref<16x1024xf32, #tpu.memory_space<vmem>>, vector<16x1024xf32>
    %c0_1 = arith.constant 0 : index
    %c0_2 = arith.constant 0 : index
    %1 = vector.load %arg2[%c0_1, %c0_2] : memref<1024x8xf32, #tpu.memory_space<vmem>>, vector<1024x8xf32>
    %cst = arith.constant dense<0.000000e+00> : vector<16x8xf32>
    %2 = tpu.matmul %0, %1, %cst {dimension_numbers = #tpu.dot_dimension_numbers<[1], [0], [0], [1], [0, 0, 1, 1], [], []>} : vector<16x1024xf32>, vector<1024x8xf32>, vector<16x8xf32> -> vector<16x8xf32>
    %c0_3 = arith.constant 0 : index
    %c0_4 = arith.constant 0 : index
    %3 = vector.load %arg3[%c0_3, %c0_4] : memref<1x8xf32, #tpu.memory_space<vmem>>, vector<1x8xf32>
    %4 = vector.broadcast %3 : vector<1x8xf32> to vector<16x8xf32>
    %5 = arith.addf %2, %4 : vector<16x8xf32>
    %c0_5 = arith.constant 0 : index
    %c0_6 = arith.constant 0 : index
    %6 = vector.load %arg4[%c0_5, %c0_6] : memref<16x8xf32, #tpu.memory_space<vmem>>, vector<16x8xf32>
    tpu.vector_store %arg4[%c0_5, %c0_6], %5 {strides = array<i32>} : memref<16x8xf32, #tpu.memory_space<vmem>>, vector<16x8xf32>,
    return
  }
  func.func @transform_0(%arg0: i32) -> (i32, i32) {
    %c0_i32 = arith.constant 0 : i32
    %c0_i32_0 = arith.constant 0 : i32
    return %arg0, %c0_i32 : i32, i32
  }
  func.func @transform_1(%arg0: i32) -> (i32, i32) {
    %c0_i32 = arith.constant 0 : i32
    %c0_i32_0 = arith.constant 0 : i32
    %c0_i32_1 = arith.constant 0 : i32
    return %c0_i32, %c0_i32_0 : i32, i32
  }
  func.func @transform_2(%arg0: i32) -> (i32, i32) {
    %c0_i32 = arith.constant 0 : i32
    %c0_i32_0 = arith.constant 0 : i32
    %c0_i32_1 = arith.constant 0 : i32
    return %c0_i32, %c0_i32_0 : i32, i32
  }
  func.func @transform_3(%arg0: i32) -> (i32, i32) {
    %c0_i32 = arith.constant 0 : i32
    %c0_i32_0 = arith.constant 0 : i32
    return %arg0, %c0_i32 : i32, i32
  }
}

</mosaic_0001>

<bundles_post_ra>
// kernel: points_predictor_forward.1
= control target key start
LH: loop header
LB: loop body
LE: loop exit
PB: predicated region body
PF: predicated region fallthrough
CT: control target
= control target key end

     0   :  { %v989_v51 = vmov 1983009808   ;;  %v188_v53 = vlaneseq  ;;  %vm641_vm0 = vcmask 64512   ;;  %s1466_s0 = inlined_call_operand.vmem [shape: f32[2,1024], index: 0, kind: input, shape index: {}]   ;;  %s1467_s1 = inlined_call_operand.vmem [shape: f32[1024,8], index: 1, kind: input, shape index: {}]   ;;  %s1468_s2 = inlined_call_operand.vmem [shape: f32[1,8], index: 2, kind: input, shape index: {}]   ;;  %s1469_s3 = inlined_call_operand.vmem [shape: f32[2,8], index: 3, kind: output, shape index: {}]  }
   0x1   :  { %v46_v0 = vld [vmem:[%s1467_s1 + $0x80] sm:$0xff]  ;;  %v47_v1 = vld [vmem:[%s1467_s1 + $0x88] sm:$0xff]  ;;  %v48_v11 = vld [vmem:[%s1467_s1 + $0x90] sm:$0xff]  ;;  %v186_v52 = vunpack.c.l.s4 %v989_v51 }
   0x2   :  { %v30_v2 = vld [vmem:[%s1467_s1] sm:$0xff]  ;;  %v836_v3 = vpack.c.bf16 %v47_v1, %v46_v0  ;;  %v31_v4 = vld [vmem:[%s1467_s1 + $0x8] sm:$0xff]  ;;  %v49_v13 = vld [vmem:[%s1467_s1 + $0x98] sm:$0xff] }
   0x3   :  { %v78_v5 = vld [vmem:[%s1467_s1 + $0x180] sm:$0xff]  ;;  %v79_v6 = vld [vmem:[%s1467_s1 + $0x188] sm:$0xff]  ;;  %v838_v7 = vpack.c.bf16 %v31_v4, %v30_v2  ;;  %v32_v14 = vld [vmem:[%s1467_s1 + $0x10] sm:$0xff]  ;;  %v840_v16 = vpack.c.bf16 %v49_v13, %v48_v11  ;;  %v187_v2 = vunpack.c.0.s8 %v186_v52 }
   0x4   :  { %v868_v8 = vpack.c.bf16 %v79_v6, %v78_v5  ;;  %v62_v9 = vld [vmem:[%s1467_s1 + $0x100] sm:$0xff]  ;;  %v63_v10 = vld [vmem:[%s1467_s1 + $0x108] sm:$0xff]  ;;  %837 = vmatprep.subr.bf16.mxu0 %v836_v3  ;;  %v33_v15 = vld [vmem:[%s1467_s1 + $0x18] sm:$0xff]  ;;  %v189_v3 = vshrl.u32 %v188_v53, 7 }
   0x5   :  { %v870_v12 = vpack.c.bf16 %v63_v10, %v62_v9  ;;  %839 = vmatpush3.bf16.msra.mxu0 %v838_v7  ;;  %v842_v17 = vpack.c.bf16 %v33_v15, %v32_v14  ;;  %v80_v18 = vld [vmem:[%s1467_s1 + $0x190] sm:$0xff]  ;;  %v81_v19 = vld [vmem:[%s1467_s1 + $0x198] sm:$0xff]  ;;  %v50_v23 = vld [vmem:[%s1467_s1 + $0xa0] sm:$0xff] }
   0x6   :  { %869 = vmatprep.subr.bf16.mxu1 %v868_v8  ;;  %v64_v20 = vld [vmem:[%s1467_s1 + $0x110] sm:$0xff]  ;;  %v872_v21 = vpack.c.bf16 %v81_v19, %v80_v18  ;;  %v65_v22 = vld [vmem:[%s1467_s1 + $0x118] sm:$0xff]  ;;  %v51_v24 = vld [vmem:[%s1467_s1 + $0xa8] sm:$0xff]  ;;  %841 = vmatprep.subr.bf16.mxu0 %v840_v16 }
   0x7   :  { %871 = vmatpush3.bf16.msra.mxu1 %v870_v12  ;;  %v874_v25 = vpack.c.bf16 %v65_v22, %v64_v20  ;;  %v844_v26 = vpack.c.bf16 %v51_v24, %v50_v23  ;;  %v34_v27 = vld [vmem:[%s1467_s1 + $0x20] sm:$0xff]  ;;  %v35_v28 = vld [vmem:[%s1467_s1 + $0x28] sm:$0xff]  ;;  %v52_v35 = vld [vmem:[%s1467_s1 + $0xb0] sm:$0xff] }
   0x8   :  { %v82_v29 = vld [vmem:[%s1467_s1 + $0x1a0] sm:$0xff]  ;;  %873 = vmatprep.subr.bf16.mxu1 %v872_v21  ;;  %v83_v30 = vld [vmem:[%s1467_s1 + $0x1a8] sm:$0xff]  ;;  %v846_v33 = vpack.c.bf16 %v35_v28, %v34_v27  ;;  %v53_v36 = vld [vmem:[%s1467_s1 + $0xb8] sm:$0xff]  ;;  %v1181_v21 = vsub.s32 %v187_v2, %v189_v3 }
   0x9   :  { %v66_v31 = vld [vmem:[%s1467_s1 + $0x120] sm:$0xff]  ;;  %v67_v32 = vld [vmem:[%s1467_s1 + $0x128] sm:$0xff]  ;;  %843 = vmatpush3.bf16.msra.mxu0 %v842_v17  ;;  %v876_v34 = vpack.c.bf16 %v83_v30, %v82_v29  ;;  %v36_v37 = vld [vmem:[%s1467_s1 + $0x30] sm:$0xff]  ;;  %v848_v39 = vpack.c.bf16 %v53_v36, %v52_v35 }
   0xa   :  { %845 = vmatprep.subr.bf16.mxu0 %v844_v26  ;;  %v878_v38 = vpack.c.bf16 %v67_v32, %v66_v31  ;;  %v37_v40 = vld [vmem:[%s1467_s1 + $0x38] sm:$0xff]  ;;  %v84_v41 = vld [vmem:[%s1467_s1 + $0x1b0] sm:$0xff]  ;;  %v54_v46 = vld [vmem:[%s1467_s1 + $0xc0] sm:$0xff] }
   0xb   :  { %875 = vmatpush3.bf16.msra.mxu1 %v874_v25  ;;  %v85_v42 = vld [vmem:[%s1467_s1 + $0x1b8] sm:$0xff]  ;;  %v68_v44 = vld [vmem:[%s1467_s1 + $0x130] sm:$0xff]  ;;  %v55_v47 = vld [vmem:[%s1467_s1 + $0xc8] sm:$0xff]  ;;  %v850_v48 = vpack.c.bf16 %v37_v40, %v36_v37 }
   0xc   :  { %877 = vmatprep.subr.bf16.mxu1 %v876_v34  ;;  %v880_v43 = vpack.c.bf16 %v85_v42, %v84_v41  ;;  %v69_v45 = vld [vmem:[%s1467_s1 + $0x138] sm:$0xff]  ;;  %v86_v49 = vld [vmem:[%s1467_s1 + $0x1c0] sm:$0xff]  ;;  %v87_v50 = vld [vmem:[%s1467_s1 + $0x1c8] sm:$0xff]  ;;  %v852_v55 = vpack.c.bf16 %v55_v47, %v54_v46 }
   0xd   :  { %847 = vmatpush3.bf16.msra.mxu0 %v846_v33  ;;  %v882_v54 = vpack.c.bf16 %v69_v45, %v68_v44  ;;  %v38_v56 = vld [vmem:[%s1467_s1 + $0x40] sm:$0xff]  ;;  %v39_v57 = vld [vmem:[%s1467_s1 + $0x48] sm:$0xff]  ;;  %v884_v59 = vpack.c.bf16 %v87_v50, %v86_v49  ;;  %v56_v61 = vld [vmem:[%s1467_s1 + $0xd0] sm:$0xff] }
   0xe   :  { %849 = vmatprep.subr.bf16.mxu0 %v848_v39  ;;  %v70_v58 = vld [vmem:[%s1467_s1 + $0x140] sm:$0xff]  ;;  %v71_v60 = vld [vmem:[%s1467_s1 + $0x148] sm:$0xff]  ;;  %v57_v62 = vld [vmem:[%s1467_s1 + $0xd8] sm:$0xff]  ;;  %v854_v1 = vpack.c.bf16 %v39_v57, %v38_v56 }
   0xf   :  { %879 = vmatpush3.bf16.msra.mxu1 %v878_v38  ;;  %v88_v63 = vld [vmem:[%s1467_s1 + $0x1d0] sm:$0xff]  ;;  %v89_v0 = vld [vmem:[%s1467_s1 + $0x1d8] sm:$0xff]  ;;  %v886_v4 = vpack.c.bf16 %v71_v60, %v70_v58  ;;  %v856_v5 = vpack.c.bf16 %v57_v62, %v56_v61  ;;  %v58_v11 = vld [vmem:[%s1467_s1 + $0xe0] sm:$0xff] }
  0x10   :  { %881 = vmatprep.subr.bf16.mxu1 %v880_v43  ;;  %v40_v6 = vld [vmem:[%s1467_s1 + $0x50] sm:$0xff]  ;;  %v41_v7 = vld [vmem:[%s1467_s1 + $0x58] sm:$0xff]  ;;  %v888_v9 = vpack.c.bf16 %v89_v0, %v88_v63  ;;  %v59_v12 = vld [vmem:[%s1467_s1 + $0xe8] sm:$0xff] }
  0x11   :  { %851 = vmatpush3.bf16.msra.mxu0 %v850_v48  ;;  %v72_v8 = vld [vmem:[%s1467_s1 + $0x150] sm:$0xff]  ;;  %v73_v10 = vld [vmem:[%s1467_s1 + $0x158] sm:$0xff]  ;;  %v42_v13 = vld [vmem:[%s1467_s1 + $0x60] sm:$0xff]  ;;  %v858_v17 = vpack.c.bf16 %v41_v7, %v40_v6  ;;  %v860_v23 = vpack.c.bf16 %v59_v12, %v58_v11 }
  0x12   :  { %853 = vmatprep.subr.bf16.mxu0 %v852_v55  ;;  %v43_v14 = vld [vmem:[%s1467_s1 + $0x68] sm:$0xff]  ;;  %v90_v15 = vld [vmem:[%s1467_s1 + $0x1e0] sm:$0xff]  ;;  %v60_v20 = vld [vmem:[%s1467_s1 + $0xf0] sm:$0xff]  ;;  %v890_v22 = vpack.c.bf16 %v73_v10, %v72_v8 }
  0x13   :  { %883 = vmatpush3.bf16.msra.mxu1 %v882_v54  ;;  %v91_v16 = vld [vmem:[%s1467_s1 + $0x1e8] sm:$0xff]  ;;  %v74_v18 = vld [vmem:[%s1467_s1 + $0x160] sm:$0xff]  ;;  %v61_v24 = vld [vmem:[%s1467_s1 + $0xf8] sm:$0xff]  ;;  %v862_v30 = vpack.c.bf16 %v43_v14, %v42_v13 }
  0x14   :  { %885 = vmatprep.subr.bf16.mxu1 %v884_v59  ;;  %v75_v19 = vld [vmem:[%s1467_s1 + $0x168] sm:$0xff]  ;;  %v892_v25 = vpack.c.bf16 %v91_v16, %v90_v15  ;;  %v965_v26 = vld [vmem:[%s1466_s0] ss:$16 sps:$4 sm:$0xff]   ;;  %v93_v28 = vld [vmem:[%s1467_s1 + $0x1f8] sm:$0xff]  ;;  %v864_v35 = vpack.c.bf16 %v61_v24, %v60_v20 }
  0x15   :  { %855 = vmatpush3.bf16.msra.mxu0 %v854_v1  ;;  %v92_v27 = vld [vmem:[%s1467_s1 + $0x1f0] sm:$0xff]  ;;  %v191_v31 = vrot.slane %v965_v26, %v1181_v21  ;;  %v894_v34 = vpack.c.bf16 %v75_v19, %v74_v18  ;;  %v45_v37 = vld [vmem:[%s1467_s1 + $0x78] sm:$0xff]  ;;  %v110_v42 = vld [vmem:[%s1467_s1 + $0x280] sm:$0xff] }
  0x16   :  { %857 = vmatprep.subr.bf16.mxu0 %v856_v5  ;;  %v967_v29 = vld [vmem:[%s1466_s0 + $0x20] ss:$16 sps:$4 sm:$0xff]   ;;  %v969_v32 = vld [vmem:[%s1466_s0 + $0x4] ss:$16 sps:$4 sm:$0xff]   ;;  %v896_v40 = vpack.c.bf16 %v93_v28, %v92_v27  ;;  %v77_v41 = vld [vmem:[%s1467_s1 + $0x178] sm:$0xff] }
  0x17   :  { %887 = vmatpush3.bf16.msra.mxu1 %v886_v4  ;;  %v970_v33 = vld [vmem:[%s1466_s0 + $0x24] ss:$16 sps:$4 sm:$0xff]   ;;  %v205_v39 = vrot.slane %v967_v29, %v1181_v21  ;;  %v111_v43 = vld [vmem:[%s1467_s1 + $0x288] sm:$0xff]  ;;  %v198_v44 = vrot.slane %v969_v32, %v1181_v21  ;;  %v113_v59 = vld [vmem:[%s1467_s1 + $0x298] sm:$0xff] }
  0x18   :  { %889 = vmatprep.subr.bf16.mxu1 %v888_v9  ;;  %v44_v36 = vld [vmem:[%s1467_s1 + $0x70] sm:$0xff]  ;;  %v212_v45 = vrot.slane %v970_v33, %v1181_v21  ;;  %v142_v47 = vld [vmem:[%s1467_s1 + $0x380] sm:$0xff]  ;;  %v143_v48 = vld [vmem:[%s1467_s1 + $0x388] sm:$0xff]  ;;  %v900_v52 = vpack.c.bf16 %v111_v43, %v110_v42 }
  0x19   :  { %859 = vmatpush3.bf16.msra.mxu0 %v858_v17  ;;  %v76_v38 = vld [vmem:[%s1467_s1 + $0x170] sm:$0xff]  ;;  %v214_v46 = vcombine.high %v191_v31, %v205_v39  ;;  %v866_v49 = vpack.c.bf16 %v45_v37, %v44_v36  ;;  %v94_v53 = vld [vmem:[%s1467_s1 + $0x200] sm:$0xff]  ;;  %v95_v54 = vld [vmem:[%s1467_s1 + $0x208] sm:$0xff]  ;;  %v932_v56 = vpack.c.bf16 %v143_v48, %v142_v47  ;;  %v213_v60 = vcombine.low %v191_v31, %v205_v39 }
  0x1a   :  { %861 = vmatprep.subr.bf16.mxu0 %v860_v23  ;;  %v216_v50 = vcombine.high %v198_v44, %v212_v45  ;;  %v898_v51 = vpack.c.bf16 %v77_v41, %v76_v38  ;;  %v126_v55 = vld [vmem:[%s1467_s1 + $0x300] sm:$0xff]  ;;  %v127_v57 = vld [vmem:[%s1467_s1 + $0x308] sm:$0xff]  ;;  %v112_v58 = vld [vmem:[%s1467_s1 + $0x290] sm:$0xff]  ;;  %v902_v63 = vpack.c.bf16 %v95_v54, %v94_v53  ;;  %v215_v0 = vcombine.low %v198_v44, %v212_v45 }
  0x1b   :  { %891 = vmatpush3.bf16.msra.mxu1 %v890_v22  ;;  %405 = vmatprep.mubr.f32.mxu0 %v214_v46  ;;  %v144_v61 = vld [vmem:[%s1467_s1 + $0x390] sm:$0xff]  ;;  %v145_v62 = vld [vmem:[%s1467_s1 + $0x398] sm:$0xff]  ;;  %v934_v1 = vpack.c.bf16 %v127_v57, %v126_v55  ;;  %v904_v2 = vpack.c.bf16 %v113_v59, %v112_v58  ;;  %v114_v8 = vld [vmem:[%s1467_s1 + $0x2a0] sm:$0xff] }
  0x1c   :  { %893 = vmatprep.subr.bf16.mxu1 %v892_v25  ;;  %480 = vmatprep.mubr.f32.mxu1 %v216_v50  ;;  %v96_v3 = vld [vmem:[%s1467_s1 + $0x210] sm:$0xff]  ;;  %v97_v4 = vld [vmem:[%s1467_s1 + $0x218] sm:$0xff]  ;;  %v936_v6 = vpack.c.bf16 %v145_v62, %v144_v61  ;;  %v115_v9 = vld [vmem:[%s1467_s1 + $0x2a8] sm:$0xff] }
  0x1d   :  { %863 = vmatpush3.bf16.msra.mxu0 %v862_v30  ;;  %v128_v5 = vld [vmem:[%s1467_s1 + $0x310] sm:$0xff]  ;;  %v129_v7 = vld [vmem:[%s1467_s1 + $0x318] sm:$0xff]  ;;  %v146_v10 = vld [vmem:[%s1467_s1 + $0x3a0] sm:$0xff]  ;;  %v906_v12 = vpack.c.bf16 %v97_v4, %v96_v3  ;;  %v908_v14 = vpack.c.bf16 %v115_v9, %v114_v8 }
  0x1e   :  { %865 = vmatprep.subr.bf16.mxu0 %v864_v35  ;;  %v147_v11 = vld [vmem:[%s1467_s1 + $0x3a8] sm:$0xff]  ;;  %v938_v13 = vpack.c.bf16 %v129_v7, %v128_v5  ;;  %v98_v15 = vld [vmem:[%s1467_s1 + $0x220] sm:$0xff]  ;;  %v116_v20 = vld [vmem:[%s1467_s1 + $0x2b0] sm:$0xff] }
  0x1f   :  { %895 = vmatpush3.bf16.msra.mxu1 %v894_v34  ;;  %v99_v16 = vld [vmem:[%s1467_s1 + $0x228] sm:$0xff]  ;;  %v130_v17 = vld [vmem:[%s1467_s1 + $0x320] sm:$0xff]  ;;  %v940_v18 = vpack.c.bf16 %v147_v11, %v146_v10  ;;  %v117_v22 = vld [vmem:[%s1467_s1 + $0x2b8] sm:$0xff] }
  0x20   :  { %897 = vmatprep.subr.bf16.mxu1 %v896_v40  ;;  %v131_v19 = vld [vmem:[%s1467_s1 + $0x328] sm:$0xff]  ;;  %v100_v23 = vld [vmem:[%s1467_s1 + $0x230] sm:$0xff]  ;;  %v101_v24 = vld [vmem:[%s1467_s1 + $0x238] sm:$0xff]  ;;  %v910_v27 = vpack.c.bf16 %v99_v16, %v98_v15  ;;  %v912_v32 = vpack.c.bf16 %v117_v22, %v116_v20 }
  0x21   :  { %867 = vmatpush3.bf16.msra.mxu0 %v866_v49  ;;  %v148_v25 = vld [vmem:[%s1467_s1 + $0x3b0] sm:$0xff]  ;;  %v149_v26 = vld [vmem:[%s1467_s1 + $0x3b8] sm:$0xff]  ;;  %v118_v30 = vld [vmem:[%s1467_s1 + $0x2c0] sm:$0xff]  ;;  %v942_v31 = vpack.c.bf16 %v131_v19, %v130_v17  ;;  %v914_v39 = vpack.c.bf16 %v101_v24, %v100_v23 }
  0x22   :  { %901 = vmatprep.subr.bf16.mxu0 %v900_v52  ;;  %v132_v28 = vld [vmem:[%s1467_s1 + $0x330] sm:$0xff]  ;;  %v133_v29 = vld [vmem:[%s1467_s1 + $0x338] sm:$0xff]  ;;  %v119_v33 = vld [vmem:[%s1467_s1 + $0x2c8] sm:$0xff]  ;;  %v944_v36 = vpack.c.bf16 %v149_v26, %v148_v25 }
  0x23   :  { %899 = vmatpush3.bf16.msra.mxu1 %v898_v51  ;;  %v150_v34 = vld [vmem:[%s1467_s1 + $0x3c0] sm:$0xff]  ;;  %v151_v35 = vld [vmem:[%s1467_s1 + $0x3c8] sm:$0xff]  ;;  %v946_v40 = vpack.c.bf16 %v133_v29, %v132_v28  ;;  %v916_v44 = vpack.c.bf16 %v119_v33, %v118_v30  ;;  %v120_v51 = vld [vmem:[%s1467_s1 + $0x2d0] sm:$0xff] }
  0x24   :  { %933 = vmatprep.subr.bf16.mxu1 %v932_v56  ;;  %406 = vmatmul.mubr.f32.vlgmr.msra.gmra.mrb[0].mxu0 %v213_v60  ;;  %v971_v37 = vld [vmem:[%s1466_s0 + $0x40] ss:$16 sps:$4 sm:$0xff]   ;;  %v103_v42 = vld [vmem:[%s1467_s1 + $0x248] sm:$0xff]  ;;  %v975_v43 = vld [vmem:[%s1466_s0 + $0x44] ss:$16 sps:$4 sm:$0xff]   ;;  %v948_v50 = vpack.c.bf16 %v151_v35, %v150_v34 }
  0x25   :  { %903 = vmatpush3.bf16.msra.mxu0 %v902_v63  ;;  %v973_v38 = vld [vmem:[%s1466_s0 + $0x60] ss:$16 sps:$4 sm:$0xff]   ;;  %v135_v46 = vld [vmem:[%s1467_s1 + $0x348] sm:$0xff]  ;;  %v263_v47 = vrot.slane %v971_v37, %v1181_v21  ;;  %v976_v49 = vld [vmem:[%s1466_s0 + $0x64] ss:$16 sps:$4 sm:$0xff]   ;;  %v270_v53 = vrot.slane %v975_v43, %v1181_v21 }
  0x26   :  { %481 = vmatmul.mubr.f32.vlgmr.msra.gmra.mrb[0].mxu1 %v215_v0  ;;  %905 = vmatprep.subr.bf16.mxu0 %v904_v2  ;;  %v102_v41 = vld [vmem:[%s1467_s1 + $0x240] sm:$0xff]  ;;  %v277_v48 = vrot.slane %v973_v38, %v1181_v21  ;;  %v121_v52 = vld [vmem:[%s1467_s1 + $0x2d8] sm:$0xff]  ;;  %v104_v54 = vld [vmem:[%s1467_s1 + $0x250] sm:$0xff]  ;;  %v284_v60 = vrot.slane %v976_v49, %v1181_v21 }
  0x27   :  { %935 = vmatpush3.bf16.msra.mxu1 %v934_v1  ;;  %v134_v45 = vld [vmem:[%s1467_s1 + $0x340] sm:$0xff]  ;;  %v105_v55 = vld [vmem:[%s1467_s1 + $0x258] sm:$0xff]  ;;  %v152_v56 = vld [vmem:[%s1467_s1 + $0x3d0] sm:$0xff]  ;;  %v918_v61 = vpack.c.bf16 %v103_v42, %v102_v41  ;;  %v920_v3 = vpack.c.bf16 %v121_v52, %v120_v51 }
  0x28   :  { %937 = vmatprep.subr.bf16.mxu1 %v936_v6  ;;  %v153_v57 = vld [vmem:[%s1467_s1 + $0x3d8] sm:$0xff]  ;;  %v286_v58 = vcombine.high %v263_v47, %v277_v48  ;;  %v285_v59 = vcombine.low %v263_v47, %v277_v48  ;;  %v950_v62 = vpack.c.bf16 %v135_v46, %v134_v45  ;;  %v136_v63 = vld [vmem:[%s1467_s1 + $0x350] sm:$0xff]  ;;  %v122_v1 = vld [vmem:[%s1467_s1 + $0x2e0] sm:$0xff]  ;;  %v288_v6 = vcombine.high %v270_v53, %v284_v60 }
  0x29   :  { %907 = vmatpush3.bf16.msra.mxu0 %v906_v12  ;;  %v137_v0 = vld [vmem:[%s1467_s1 + $0x358] sm:$0xff]  ;;  %v123_v2 = vld [vmem:[%s1467_s1 + $0x2e8] sm:$0xff]  ;;  %v154_v4 = vld [vmem:[%s1467_s1 + $0x3e0] sm:$0xff]  ;;  %v287_v7 = vcombine.low %v270_v53, %v284_v60  ;;  %v952_v10 = vpack.c.bf16 %v153_v57, %v152_v56  ;;  %v922_v15 = vpack.c.bf16 %v105_v55, %v104_v54 }
  0x2a   :  { %909 = vmatprep.subr.bf16.mxu0 %v908_v14  ;;  %v155_v5 = vld [vmem:[%s1467_s1 + $0x3e8] sm:$0xff]  ;;  %410 = vmatprep.mubr.f32.mxu0 %v286_v58  ;;  %v924_v19 = vpack.c.bf16 %v123_v2, %v122_v1  ;;  %v106_v20 = vld [vmem:[%s1467_s1 + $0x260] sm:$0xff]  ;;  %v125_v28 = vld [vmem:[%s1467_s1 + $0x2f8] sm:$0xff] }
  0x2b   :  { %939 = vmatpush3.bf16.msra.mxu1 %v938_v13  ;;  %v977_v8 = vld [vmem:[%s1466_s0 + $0x8] ss:$16 sps:$4 sm:$0xff]   ;;  %v981_v11 = vld [vmem:[%s1466_s0 + $0xc] ss:$16 sps:$4 sm:$0xff]   ;;  %411 = vmatmul.mubr.f32.gmra.mrb[2].mxu0 %v285_v59  ;;  %v138_v23 = vld [vmem:[%s1467_s1 + $0x360] sm:$0xff]  ;;  %v956_v25 = vpack.c.bf16 %v155_v5, %v154_v4 }
  0x2c   :  { %941 = vmatprep.subr.bf16.mxu1 %v940_v18  ;;  %v979_v9 = vld [vmem:[%s1466_s0 + $0x28] ss:$16 sps:$4 sm:$0xff]   ;;  %v982_v12 = vld [vmem:[%s1466_s0 + $0x2c] ss:$16 sps:$4 sm:$0xff]   ;;  %485 = vmatprep.mubr.f32.mxu1 %v288_v6  ;;  %v227_v13 = vrot.slane %v977_v8, %v1181_v21  ;;  %v234_v16 = vrot.slane %v981_v11, %v1181_v21  ;;  %v954_v18 = vpack.c.bf16 %v137_v0, %v136_v63  ;;  %v156_v30 = vld [vmem:[%s1467_s1 + $0x3f0] sm:$0xff] }
  0x2d   :  { %911 = vmatpush3.bf16.msra.mxu0 %v910_v27  ;;  %v241_v14 = vrot.slane %v979_v9, %v1181_v21  ;;  %486 = vmatmul.mubr.f32.gmra.mrb[2].mxu1 %v287_v7  ;;  %v248_v17 = vrot.slane %v982_v12, %v1181_v21  ;;  %v107_v22 = vld [vmem:[%s1467_s1 + $0x268] sm:$0xff]  ;;  %v124_v27 = vld [vmem:[%s1467_s1 + $0x2f0] sm:$0xff]  ;;  %v109_v38 = vld [vmem:[%s1467_s1 + $0x278] sm:$0xff] }
  0x2e   :  { %913 = vmatprep.subr.bf16.mxu0 %v912_v32  ;;  %v139_v26 = vld [vmem:[%s1467_s1 + $0x368] sm:$0xff]  ;;  %v926_v32 = vpack.c.bf16 %v107_v22, %v106_v20  ;;  %v108_v33 = vld [vmem:[%s1467_s1 + $0x270] sm:$0xff]  ;;  %v928_v37 = vpack.c.bf16 %v125_v28, %v124_v27  ;;  %v141_v43 = vld [vmem:[%s1467_s1 + $0x378] sm:$0xff] }
  0x2f   :  { %943 = vmatpush3.bf16.msra.mxu1 %v942_v31  ;;  %v250_v24 = vcombine.high %v227_v13, %v241_v14  ;;  %v252_v29 = vcombine.high %v234_v16, %v248_v17  ;;  %v157_v31 = vld [vmem:[%s1467_s1 + $0x3f8] sm:$0xff]  ;;  %v140_v42 = vld [vmem:[%s1467_s1 + $0x370] sm:$0xff]  ;;  %v251_v51 = vcombine.low %v234_v16, %v248_v17 }
  0x30   :  { %945 = vmatprep.subr.bf16.mxu1 %v944_v36  ;;  %v983_v34 = vld [vmem:[%s1466_s0 + $0x48] ss:$16 sps:$4 sm:$0xff]   ;;  %v958_v36 = vpack.c.bf16 %v139_v26, %v138_v23  ;;  %v960_v41 = vpack.c.bf16 %v157_v31, %v156_v30  ;;  %v962_v47 = vpack.c.bf16 %v141_v43, %v140_v42 }
  0x31   :  { %915 = vmatpush3.bf16.msra.mxu0 %v914_v39  ;;  %555 = vmatprep.mubr.f32.mxu0 %v250_v24  ;;  %v985_v35 = vld [vmem:[%s1466_s0 + $0x68] ss:$16 sps:$4 sm:$0xff]   ;;  %v987_v39 = vld [vmem:[%s1466_s0 + $0x4c] ss:$16 sps:$4 sm:$0xff]   ;;  %v299_v45 = vrot.slane %v983_v34, %v1181_v21 }
  0x32   :  { %917 = vmatprep.subr.bf16.mxu0 %v916_v44  ;;  %630 = vmatprep.mubr.f32.mxu1 %v252_v29  ;;  %v930_v44 = vpack.c.bf16 %v109_v38, %v108_v33  ;;  %v313_v46 = vrot.slane %v985_v35, %v1181_v21  ;;  %v306_v48 = vrot.slane %v987_v39, %v1181_v21 }
  0x33   :  { %947 = vmatpush3.bf16.msra.mxu1 %v946_v40  ;;  %v988_v40 = vld [vmem:[%s1466_s0 + $0x6c] ss:$16 sps:$4 sm:$0xff]  }
  0x34   :  { %949 = vmatprep.subr.bf16.mxu1 %v948_v50  ;;  %v320_v49 = vrot.slane %v988_v40, %v1181_v21  ;;  %v249_v50 = vcombine.low %v227_v13, %v241_v14  ;;  %v322_v52 = vcombine.high %v299_v45, %v313_v46  ;;  %v321_v54 = vcombine.low %v299_v45, %v313_v46  ;;  %v683_v21 = vld [vmem:[%s1468_s2] ss:$0 sm:$0xff] }
  0x35   :  { %919 = vmatpush3.bf16.msra.mxu0 %v918_v61 }
  0x36   :  { %921 = vmatprep.subr.bf16.mxu0 %v920_v3  ;;  %v324_v53 = vcombine.high %v306_v48, %v320_v49  ;;  %v323_v55 = vcombine.low %v306_v48, %v320_v49 }
  0x37   :  { %951 = vmatpush3.bf16.msra.mxu1 %v950_v62 }
  0x38   :  { %953 = vmatprep.subr.bf16.mxu1 %v952_v10 }
  0x39   :  { %923 = vmatpush3.bf16.msra.mxu0 %v922_v15 }
  0x3a   :  { %925 = vmatprep.subr.bf16.mxu0 %v924_v19 }
  0x3b   :  { %955 = vmatpush3.bf16.msra.mxu1 %v954_v18 }
  0x3c   :  { %957 = vmatprep.subr.bf16.mxu1 %v956_v25 }
  0x3d   :  { %927 = vmatpush3.bf16.msra.mxu0 %v926_v32 }
  0x3e   :  { %929 = vmatprep.subr.bf16.mxu0 %v928_v37 }
  0x3f   :  { %959 = vmatpush3.bf16.msra.mxu1 %v958_v36 }
  0x40   :  { %961 = vmatprep.subr.bf16.mxu1 %v960_v41 }
  0x41   :  { %931 = vmatpush3.bf16.msra.mxu0 %v930_v44 }
  0x43   :  { %963 = vmatpush3.bf16.msra.mxu1 %v962_v47 }
  0x44   :  { %556 = vmatmul.mubr.f32.vlgmr.msra.gmra.mrb[4].mxu0 %v249_v50 }
  0x45   :  { %560 = vmatprep.mubr.f32.mxu0 %v322_v52 }
  0x46   :  { %631 = vmatmul.mubr.f32.vlgmr.msra.gmra.mrb[4].mxu1 %v251_v51 }
  0x47   :  { %635 = vmatprep.mubr.f32.mxu1 %v324_v53 }
  0x48   :  { %561 = vmatmul.mubr.f32.gmra.mrb[6].mxu0 %v321_v54 }
  0x4a   :  { %636 = vmatmul.mubr.f32.gmra.mrb[6].mxu1 %v323_v55 }
  0xf7   :  { %v716_v56 = vpop.f32.mrb[0].mxu0 }
  0xf8   :  { %v717_v57 = vpop.f32.mrb[1].mxu0 }
  0xf9   :  { %v754_v58 = vpop.f32.mrb[0].mxu1  ;;  %v718_v59 = vadd.f32 %v717_v57, %v716_v56 }
  0xfa   :  { %v755_v60 = vpop.f32.mrb[1].mxu1 }
  0xfb   :  { %v756_v61 = vadd.f32 %v755_v60, %v754_v58  ;;  %v408_v62 = vadd.f32 %v718_v59, %v683_v21 }
  0xfd   :  { %v483_v63 = vadd.f32 %v756_v61, %v408_v62 }
  0xfe   :  { %v719_v0 = vpop.f32.mrb[2].mxu0 }
  0xff   :  { %v720_v1 = vpop.f32.mrb[3].mxu0 }
 0x100   :  { %v757_v2 = vpop.f32.mrb[2].mxu1 }
 0x101   :  { %v758_v3 = vpop.f32.mrb[3].mxu1 }
 0x117   :  { %v792_v4 = vpop.f32.mrb[4].mxu0 }
 0x118   :  { %v793_v5 = vpop.f32.mrb[5].mxu0 }
 0x119   :  { %v830_v6 = vpop.f32.mrb[4].mxu1  ;;  %v794_v7 = vadd.f32 %v793_v5, %v792_v4 }
 0x11a   :  { %v831_v8 = vpop.f32.mrb[5].mxu1 }
 0x11b   :  { %v832_v9 = vadd.f32 %v831_v8, %v830_v6  ;;  %v558_v10 = vadd.f32 %v794_v7, %v483_v63  ;;  %v795_v11 = vpop.f32.mrb[6].mxu0 }
 0x11c   :  { %v796_v12 = vpop.f32.mrb[7].mxu0 }
 0x11d   :  { %v833_v13 = vpop.f32.mrb[6].mxu1  ;;  %v633_v14 = vadd.f32 %v832_v9, %v558_v10 }
 0x11e   :  { %v834_v15 = vpop.f32.mrb[7].mxu1 }
 0x11f   :  { %642 = vst.msk [vmem:[#allocation2] sm:$0xff] %vm641_vm0, %v633_v14 }
 0x126   :  { %v661_v16 = vld [vmem:[#allocation2] sm:$0x3] }
 0x127   :  { %662 = vst [vmem:[%s1469_s3] sm:$0x3] %v661_v16 }

</bundles_post_ra>
